<compile_context>
chip_gen: v7x
topology: tpu7x:2x2x1
jax: 0.10.0
libtpu: 0.0.40
codegen_flags: <defaults>
</compile_context>

<pallas_src>
import functools

import jax
import jax.numpy as jnp
from jax import lax
from jax.experimental import pallas as pl
from jax.experimental.pallas import tpu as pltpu


# ----------------------------------------------------------------------------
# Fused kernel: conv(im2col matmul) + bias + ReLU + mask, then the selected
# per-pixel agent head matmul, written as one lane-dense (N, HW) slab.
# ----------------------------------------------------------------------------
def _fused_kernel(labels_ref, patches_ref, cw_ref, cb_ref, mask_ref,
                  fw_ref, fb_ref, out_ref):
    # labels_ref:  SMEM (B,) int32            (scalar prefetch)
    # patches_ref: (1, 9*Cin, HW)             im2col patches for this batch elem
    # cw_ref:      (Cout, 9*Cin)              conv weight, im2col layout
    # cb_ref:      (Cout, 1)                  conv bias
    # mask_ref:    (1, 1, HW)                 maskings for this batch element
    # fw_ref:      (A, N, Cout)               all agent-head weights (resident)
    # fb_ref:      (A, N, 1)                  all agent-head biases  (resident)
    # out_ref:     (1, N, HW)                 combined (unit ++ citytile) logits
    b = pl.program_id(0)

    # get_feature: 3x3 SAME conv as one K=36 MXU matmul, lane dim = HW.
    feat = jnp.dot(cw_ref[...], patches_ref[0],
                   preferred_element_type=jnp.float32)        # (Cout, HW)
    feat = jnp.maximum(feat + cb_ref[...], 0.0)               # bias + ReLU (VPU)
    feat = feat * mask_ref[0]                                 # (Cout,HW)*(1,HW)

    # Select this batch element's agent head from the resident VMEM stack
    # (replaces the PyTorch compute-all-heads + torch.gather).
    lbl = labels_ref[b]
    w = fw_ref[lbl]                                           # (N, Cout)
    bias = fb_ref[lbl]                                        # (N, 1)

    y = jnp.dot(w, feat, preferred_element_type=jnp.float32) + bias   # (N, HW)
    out_ref[0] = y


# ----------------------------------------------------------------------------
# Wrapper: NCHW states -> im2col patches (lane-dense), fused pallas_call,
# then split combined output into (unit, citytile) NHWC tensors.
# ----------------------------------------------------------------------------
def _im2col_patches(states_nchw):
    # (B, Cin, H, W) -> (B, 9*Cin, H*W), tap-major then channel (t*Cin + c).
    B, C, H, W = states_nchw.shape
    xpad = jnp.pad(states_nchw, ((0, 0), (0, 0), (1, 1), (1, 1)))
    taps = []
    for ky in range(3):
        for kx in range(3):
            taps.append(xpad[:, :, ky:ky + H, kx:kx + W])
    p = jnp.stack(taps, axis=0)                       # (9, B, C, H, W)
    p = jnp.transpose(p, (1, 0, 2, 3, 4))             # (B, 9, C, H, W)
    return p.reshape(B, 9 * C, H * W)


@functools.partial(jax.jit, static_argnames=("num_unit_actions",
                                             "num_citytile_actions"))
def multiple_agents_net_forward(states_nchw, labels, maskings, params,
                                num_unit_actions, num_citytile_actions):
    B, Cin, H, W = states_nchw.shape
    Cout = params["conv_w"].shape[-1]
    A, C, N = params["fc_w"].shape
    assert C == Cout
    assert N == num_unit_actions + num_citytile_actions
    HW = H * W
    K9 = 9 * Cin

    # Layout plumbing (cheap XLA ops): lane dim = HW everywhere.
    patches = _im2col_patches(states_nchw)                            # (B, K9, HW)
    cw = jnp.transpose(params["conv_w"], (3, 0, 1, 2)).reshape(Cout, K9)
    cb = params["conv_b"].reshape(Cout, 1)
    mask = maskings.astype(jnp.float32).reshape(B, 1, HW)
    fw = jnp.transpose(params["fc_w"], (0, 2, 1))                     # (A, N, C)
    fb = params["fc_b"].reshape(A, N, 1)
    labels = labels.astype(jnp.int32)

    grid_spec = pltpu.PrefetchScalarGridSpec(
        num_scalar_prefetch=1,
        grid=(B,),
        in_specs=[
            pl.BlockSpec((1, K9, HW), lambda b, lbl: (b, 0, 0)),   # patches
            pl.BlockSpec((Cout, K9), lambda b, lbl: (0, 0)),       # conv weight
            pl.BlockSpec((Cout, 1), lambda b, lbl: (0, 0)),        # conv bias
            pl.BlockSpec((1, 1, HW), lambda b, lbl: (b, 0, 0)),    # mask
            pl.BlockSpec((A, N, Cout), lambda b, lbl: (0, 0, 0)),  # fc weights
            pl.BlockSpec((A, N, 1), lambda b, lbl: (0, 0, 0)),     # fc biases
        ],
        out_specs=pl.BlockSpec((1, N, HW), lambda b, lbl: (b, 0, 0)),
    )

    out = pl.pallas_call(
        _fused_kernel,
        out_shape=jax.ShapeDtypeStruct((B, N, HW), jnp.float32),
        grid_spec=grid_spec,
        compiler_params=pltpu.CompilerParams(
            dimension_semantics=("parallel",)),
    )(labels, patches, cw, cb, mask, fw, fb)

    # (B, N, HW) -> (B, H, W, N), then split unit / citytile actions.
    out = jnp.transpose(out, (0, 2, 1)).reshape(B, H, W, N)
    return out[..., :num_unit_actions], out[..., num_unit_actions:]


# ----------------------------------------------------------------------------
# Pure-JAX reference (mirrors the PyTorch forward, incl. compute-all + gather)
# ----------------------------------------------------------------------------
def reference_forward(states_nchw, labels, maskings, params,
                      num_unit_actions, num_citytile_actions):
    x = jnp.transpose(states_nchw, (0, 2, 3, 1))  # NHWC
    feat = lax.conv_general_dilated(
        x, params["conv_w"], window_strides=(1, 1), padding="SAME",
        dimension_numbers=("NHWC", "HWIO", "NHWC"))
    feat = jnp.maximum(feat + params["conv_b"], 0.0) * maskings[..., None]
    B, H, W, C = feat.shape
    flat = feat.reshape(B, H * W, C)
    # all agent heads: (B, A, H*W, N), then gather by label (dim=1)
    outs = jnp.einsum("bpc,acn->bapn", flat, params["fc_w"]) \
        + params["fc_b"][None, :, None, :]
    sel = outs[jnp.arange(B), labels]
    sel = sel.reshape(B, H, W, -1)
    return sel[..., :num_unit_actions], sel[..., num_unit_actions:]


if __name__ == "__main__":
    # Small shapes consistent with the module.
    B, Cin, H, W = 2, 4, 16, 16
    feature_size = 32
    num_unit_actions = 12
    num_citytile_actions = 4
    num_actions = num_unit_actions + num_citytile_actions
    num_agents = 3

    key = jax.random.PRNGKey(0)
    k_s, k_m, k_l, k_cw, k_cb, k_fw, k_fb = jax.random.split(key, 7)

    states = jax.random.normal(k_s, (B, Cin, H, W), jnp.float32)        # NCHW like PyTorch
    maskings = (jax.random.uniform(k_m, (B, H, W)) > 0.3).astype(jnp.float32)
    labels = jax.random.randint(k_l, (B,), 0, num_agents, jnp.int32)

    params = {
        # synthetic PolicyNetwork.get_feature conv: HWIO
        "conv_w": 0.1 * jax.random.normal(k_cw, (3, 3, Cin, feature_size), jnp.float32),
        "conv_b": 0.1 * jax.random.normal(k_cb, (feature_size,), jnp.float32),
        # head 0 = policy_net.fc1, heads 1..A-1 = fc_list (stacked, (C, N) layout)
        "fc_w": 0.1 * jax.random.normal(k_fw, (num_agents, feature_size, num_actions), jnp.float32),
        "fc_b": 0.1 * jax.random.normal(k_fb, (num_agents, num_actions), jnp.float32),
    }

    out_u, out_c = multiple_agents_net_forward(
        states, labels, maskings, params, num_unit_actions, num_citytile_actions)
    out_u = jax.block_until_ready(out_u)
    out_c = jax.block_until_ready(out_c)

    ref_u, ref_c = reference_forward(
        states, labels, maskings, params, num_unit_actions, num_citytile_actions)

    assert out_u.shape == (B, H, W, num_unit_actions)
    assert out_c.shape == (B, H, W, num_citytile_actions)
    assert jnp.allclose(out_u, ref_u, atol=1e-4, rtol=1e-4)
    assert jnp.allclose(out_c, ref_c, atol=1e-4, rtol=1e-4)

    print("KERNEL_OK")
</pallas_src>

<mosaic_0001>
module attributes {stable_mosaic.version = 11 : i64} {
  func.func @_fused_kernel(%arg0: i32, %arg1: memref<2xi32, #tpu.memory_space<smem>>, %arg2: memref<1x36x256xf32, #tpu.memory_space<vmem>>, %arg3: memref<32x36xf32, #tpu.memory_space<vmem>>, %arg4: memref<32x1xf32, #tpu.memory_space<vmem>>, %arg5: memref<1x1x256xf32, #tpu.memory_space<vmem>>, %arg6: memref<3x16x32xf32, #tpu.memory_space<vmem>>, %arg7: memref<3x16x1xf32, #tpu.memory_space<vmem>>, %arg8: memref<1x16x256xf32, #tpu.memory_space<vmem>>) attributes {dimension_semantics = [#tpu.dimension_semantics<parallel>], iteration_bounds = array<i64: 2>, scalar_prefetch = 1 : i64, scratch_operands = 0 : i64, tpu.core_type = #tpu.core_type<tc>, window_params = [{transform_indices = @transform_0, window_bounds = array<i64: 1, 36, 256>}, {pipeline_mode = #tpu.pipeline_mode<synchronous>, transform_indices = @transform_1, window_bounds = array<i64: 32, 36>}, {pipeline_mode = #tpu.pipeline_mode<synchronous>, transform_indices = @transform_2, window_bounds = array<i64: 32, 1>}, {transform_indices = @transform_3, window_bounds = array<i64: 1, 1, 256>}, {pipeline_mode = #tpu.pipeline_mode<synchronous>, transform_indices = @transform_4, window_bounds = array<i64: 3, 16, 32>}, {pipeline_mode = #tpu.pipeline_mode<synchronous>, transform_indices = @transform_5, window_bounds = array<i64: 3, 16, 1>}, {transform_indices = @transform_6, window_bounds = array<i64: 1, 16, 256>}]} {
    %c0 = arith.constant 0 : index
    %c0_0 = arith.constant 0 : index
    %0 = vector.load %arg3[%c0, %c0_0] : memref<32x36xf32, #tpu.memory_space<vmem>>, vector<32x36xf32>
    %c0_1 = arith.constant 0 : index
    %c0_2 = arith.constant 0 : index
    %c0_3 = arith.constant 0 : index
    %1 = vector.load %arg2[%c0_1, %c0_2, %c0_3] : memref<1x36x256xf32, #tpu.memory_space<vmem>>, vector<1x36x256xf32>
    %2 = vector.shape_cast %1 : vector<1x36x256xf32> to vector<36x256xf32>
    %cst = arith.constant dense<0.000000e+00> : vector<32x256xf32>
    %3 = tpu.matmul %0, %2, %cst {dimension_numbers = #tpu.dot_dimension_numbers<[1], [0], [0], [1], [0, 0, 1, 1], [], []>} : vector<32x36xf32>, vector<36x256xf32>, vector<32x256xf32> -> vector<32x256xf32>
    %c0_4 = arith.constant 0 : index
    %c0_5 = arith.constant 0 : index
    %4 = vector.load %arg4[%c0_4, %c0_5] : memref<32x1xf32, #tpu.memory_space<vmem>>, vector<32x1xf32>
    %5 = vector.broadcast %4 : vector<32x1xf32> to vector<32x256xf32>
    %6 = arith.addf %3, %5 : vector<32x256xf32>
    %cst_6 = arith.constant 0.000000e+00 : f32
    %7 = vector.broadcast %cst_6 : f32 to vector<32x256xf32>
    %8 = arith.maximumf %6, %7 : vector<32x256xf32>
    %c0_7 = arith.constant 0 : index
    %c0_8 = arith.constant 0 : index
    %c0_9 = arith.constant 0 : index
    %9 = vector.load %arg5[%c0_7, %c0_8, %c0_9] : memref<1x1x256xf32, #tpu.memory_space<vmem>>, vector<1x1x256xf32>
    %10 = vector.shape_cast %9 : vector<1x1x256xf32> to vector<1x256xf32>
    %11 = vector.broadcast %10 : vector<1x256xf32> to vector<32x256xf32>
    %12 = arith.mulf %8, %11 : vector<32x256xf32>
    %13 = arith.index_cast %arg0 : i32 to index
    %14 = memref.load %arg1[%13] : memref<2xi32, #tpu.memory_space<smem>>
    %15 = arith.index_cast %14 : i32 to index
    %c0_10 = arith.constant 0 : index
    %c0_11 = arith.constant 0 : index
    %16 = vector.load %arg6[%15, %c0_10, %c0_11] : memref<3x16x32xf32, #tpu.memory_space<vmem>>, vector<1x16x32xf32>
    %17 = vector.shape_cast %16 : vector<1x16x32xf32> to vector<16x32xf32>
    %18 = arith.index_cast %14 : i32 to index
    %c0_12 = arith.constant 0 : index
    %c0_13 = arith.constant 0 : index
    %19 = vector.load %arg7[%18, %c0_12, %c0_13] : memref<3x16x1xf32, #tpu.memory_space<vmem>>, vector<1x16x1xf32>
    %20 = vector.shape_cast %19 : vector<1x16x1xf32> to vector<16x1xf32>
    %cst_14 = arith.constant dense<0.000000e+00> : vector<16x256xf32>
    %21 = tpu.matmul %17, %12, %cst_14 {dimension_numbers = #tpu.dot_dimension_numbers<[1], [0], [0], [1], [0, 0, 1, 1], [], []>} : vector<16x32xf32>, vector<32x256xf32>, vector<16x256xf32> -> vector<16x256xf32>
    %22 = vector.broadcast %20 : vector<16x1xf32> to vector<16x256xf32>
    %23 = arith.addf %21, %22 : vector<16x256xf32>
    %c0_15 = arith.constant 0 : index
    %c0_16 = arith.constant 0 : index
    %c0_17 = arith.constant 0 : index
    %24 = vector.load %arg8[%c0_15, %c0_16, %c0_17] : memref<1x16x256xf32, #tpu.memory_space<vmem>>, vector<1x16x256xf32>
    %25 = vector.shape_cast %24 : vector<1x16x256xf32> to vector<16x256xf32>
    %26 = vector.shape_cast %23 : vector<16x256xf32> to vector<1x16x256xf32>
    tpu.vector_store %arg8[%c0_15, %c0_16, %c0_17], %26 {strides = array<i32>} : memref<1x16x256xf32, #tpu.memory_space<vmem>>, vector<1x16x256xf32>,
    return
  }
  func.func @transform_0(%arg0: i32, %arg1: memref<2xi32, #tpu.memory_space<smem>>) -> (i32, i32, i32) {
    %c0_i32 = arith.constant 0 : i32
    %c0_i32_0 = arith.constant 0 : i32
    %c0_i32_1 = arith.constant 0 : i32
    return %arg0, %c0_i32, %c0_i32_0 : i32, i32, i32
  }
  func.func @transform_1(%arg0: i32, %arg1: memref<2xi32, #tpu.memory_space<smem>>) -> (i32, i32) {
    %c0_i32 = arith.constant 0 : i32
    %c0_i32_0 = arith.constant 0 : i32
    %c0_i32_1 = arith.constant 0 : i32
    return %c0_i32, %c0_i32_0 : i32, i32
  }
  func.func @transform_2(%arg0: i32, %arg1: memref<2xi32, #tpu.memory_space<smem>>) -> (i32, i32) {
    %c0_i32 = arith.constant 0 : i32
    %c0_i32_0 = arith.constant 0 : i32
    %c0_i32_1 = arith.constant 0 : i32
    return %c0_i32, %c0_i32_0 : i32, i32
  }
  func.func @transform_3(%arg0: i32, %arg1: memref<2xi32, #tpu.memory_space<smem>>) -> (i32, i32, i32) {
    %c0_i32 = arith.constant 0 : i32
    %c0_i32_0 = arith.constant 0 : i32
    %c0_i32_1 = arith.constant 0 : i32
    return %arg0, %c0_i32, %c0_i32_0 : i32, i32, i32
  }
  func.func @transform_4(%arg0: i32, %arg1: memref<2xi32, #tpu.memory_space<smem>>) -> (i32, i32, i32) {
    %c0_i32 = arith.constant 0 : i32
    %c0_i32_0 = arith.constant 0 : i32
    %c0_i32_1 = arith.constant 0 : i32
    %c0_i32_2 = arith.constant 0 : i32
    return %c0_i32, %c0_i32_0, %c0_i32_1 : i32, i32, i32
  }
  func.func @transform_5(%arg0: i32, %arg1: memref<2xi32, #tpu.memory_space<smem>>) -> (i32, i32, i32) {
    %c0_i32 = arith.constant 0 : i32
    %c0_i32_0 = arith.constant 0 : i32
    %c0_i32_1 = arith.constant 0 : i32
    %c0_i32_2 = arith.constant 0 : i32
    return %c0_i32, %c0_i32_0, %c0_i32_1 : i32, i32, i32
  }
  func.func @transform_6(%arg0: i32, %arg1: memref<2xi32, #tpu.memory_space<smem>>) -> (i32, i32, i32) {
    %c0_i32 = arith.constant 0 : i32
    %c0_i32_0 = arith.constant 0 : i32
    %c0_i32_1 = arith.constant 0 : i32
    return %arg0, %c0_i32, %c0_i32_0 : i32, i32, i32
  }
}

</mosaic_0001>

<bundles_post_ra>
// kernel: multiple_agents_net_forward.1
= control target key start
LH: loop header
LB: loop body
LE: loop exit
PB: predicated region body
PF: predicated region fallthrough
CT: control target
= control target key end

     0   :  { %s815_s0 = inlined_call_operand.vmem [shape: s32[2], index: 0, kind: input, shape index: {}]   ;;  %s816_s1 = inlined_call_operand.vmem [shape: f32[2,36,256], index: 1, kind: input, shape index: {}]   ;;  %s817_s2 = inlined_call_operand.vmem [shape: f32[32,36], index: 2, kind: input, shape index: {}]   ;;  %s818_s3 = inlined_call_operand.vmem [shape: f32[32,1], index: 3, kind: input, shape index: {}]   ;;  %s819_s4 = inlined_call_operand.vmem [shape: f32[2,1,256], index: 4, kind: input, shape index: {}]   ;;  %s820_s5 = inlined_call_operand.vmem [shape: f32[3,16,32], index: 5, kind: input, shape index: {}]   ;;  %s821_s6 = inlined_call_operand.vmem [shape: f32[3,16,1], index: 6, kind: input, shape index: {}]   ;;  %s822_s7 = inlined_call_operand.vmem [shape: f32[2,16,256], index: 7, kind: output, shape index: {}]  }
   0x1   :  { %s12_s26 = sshll.u32 %s815_s0, 4  ;;  %s13_s26 = int_to_ptr.vmem [resolvable:$true] %s12_s26 }
   0x2   :  { %s679_s27 = scalar_lea.vmem %s13_s26, 16  ;;  %p684_p1 = scmp.lt.s32.totalorder %s13_s26, %s13_s26 }
   0x3   :  { %p680_p0 = scmp.ne.s32.totalorder %s13_s26, %s679_s27  ;;  %p685_p2 = scmp.lt.s32.totalorder %s679_s27, %s679_s27 }
   0x5   :  { %p686_p3 = por %p685_p2, %p684_p1 }
   0x7   :  { %p687_p4 = pnand %p686_p3, %p680_p0 }
   0x9   :  { %690 = shalt.err (!%p687_p4)  }
   0xa   :  { %s701_s28 = smov [#allocation3]  }
   0xb   :  { %15 = dma.vmem_to_smem %s13_s26, 16, %s701_s28, [#allocation2] }
   0xc   :  { %695 = dma.done.wait [#allocation2], 16 }
   0xd   :  { %696 = vsyncadd [#allocation2], 4294967280 }
   0xe   :  { %17 = sfence }
   0xf   :  { %s747_s29 = smov 0  }
  0x10 LB: > { %s628_s0 = sadd.s32 4294967295, %s699_s29   ;;  %p632_p5 = scmp.ge.s32.totalorder %s699_s29, 1  ;;  %s699_s29 = sphi %s747_s29, %s23_s29  }
  0x11   : > { %p228_p6 = scmp.lt.s32.totalorder %s699_s29, 3 }
  0x13   : > { %p229_p7 = pnand %p632_p5, %p228_p6 }
  0x14   : > { %p262_p8 = scmp.lt.s32.totalorder (!%p229_p7), %s628_s0, 1  ;;  %v702_v0 = vmov (!%p229_p7), 0.0   ;;  %v290_v1 = vld [vmem:[%s818_s3] sm:$0xff] (!%p229_p7)  ;;  %s759_s9 = sld [smem:[#allocation3 + %s628_s0]] (!%p229_p7)  ;;  %v703_v2 = vmov (!%p229_p7), 0   ;;  %v292_v3 = vld [vmem:[%s818_s3 + $0x10] sm:$0xff] (!%p229_p7)  ;;  %v433_v26 = vlaneseq (!%p229_p7) }
  0x15   : > { %232 = sbr.rel (%p229_p7) target bundleno = 502 (0x1f6), region = 44  ;;  %398 = vmatprep.mubr.f32.mxu0 (!%p229_p7), %v702_v0  ;;  %540 = vmatprep.mubr.f32.mxu1 (!%p229_p7), %v702_v0  ;;  %v291_v4 = vld [vmem:[%s818_s3 + $0x8] sm:$0xff] (!%p229_p7)  ;;  %v293_v5 = vld [vmem:[%s818_s3 + $0x18] sm:$0xff] (!%p229_p7)  ;;  %vm327_vm0 = vcmask (!%p229_p7), 1043456   ;;  %v276_v22 = vld [vmem:[%s817_s2] sm:$0xff] (!%p229_p7)  ;;  %vm314_vm1 = vcmask (!%p229_p7), 293888  }
  0x16   : > { %677 = vset.pattern.permute.xlu0 (!%p229_p7), %v703_v2  ;;  %678 = vset.pattern.permute.xlu1 (!%p229_p7), %v703_v2  ;;  %v277_v23 = vld [vmem:[%s817_s2 + $0x8] sm:$0xff] (!%p229_p7)  ;;  %v278_v24 = vld [vmem:[%s817_s2 + $0x10] sm:$0xff] (!%p229_p7)  ;;  %v279_v25 = vld [vmem:[%s817_s2 + $0x18] sm:$0xff] (!%p229_p7)  ;;  %v434_v27 = vshrl.u32 (!%p229_p7), %v433_v26, 7  ;;  %vm469_vm2 = vcmask (!%p229_p7), 261120  }
  0x17   : > { %296 = vperm.xlu0 (!%p229_p7), %677, %v290_v1   ;;  %306 = vperm.xlu1 (!%p229_p7), %678, %v292_v3  }
  0x18   : > { %v435_v31 = vsub.s32 (!%p229_p7), 0, %v434_v27  ;;  %v439_v35 = vsub.s32 (!%p229_p7), 1, %v434_v27 }
  0x1a   : > { %s643_s20 = sshll.u32 (!%p229_p7), %s759_s9, 4 }
  0x1b   : > { %301 = vperm.xlu0 (!%p229_p7), %677, %v291_v4   ;;  %311 = vperm.xlu1 (!%p229_p7), %678, %v293_v5   ;;  %s456_s23 = scalar_lea.vmem (!%p229_p7), %s821_s6, %s643_s20  ;;  %s453_s17 = scalar_lea.vmem (!%p229_p7), %s820_s5, %s643_s20 }
  0x1c   : > { %s824_s0 = smov (!%p262_p8, %s628_s0), 1  ;;  %v457_v17 = vld [vmem:[%s456_s23] sm:$0xff]  ;;  %v458_v18 = vld [vmem:[%s456_s23 + $0x8] sm:$0xff] }
  0x1d   : > { %s665_s12 = smul.u32 80, %s824_s0  ;;  %s634_s11 = sshll.u32 %s824_s0, 1 }
  0x1e   : > { %s270_s14 = scalar_lea.vmem %s819_s4, %s634_s11  ;;  %s648_s18 = sshll.u32 %s824_s0, 5 }
  0x1f   : > { %s266_s19 = scalar_lea.vmem %s816_s1, %s665_s12  ;;  %461 = vperm.xlu0 %677, %v457_v17   ;;  %466 = vperm.xlu1 %678, %v458_v18   ;;  %v431_v33 = vld [vmem:[%s270_s14] sm:$0x3]  ;;  %s275_s22 = scalar_lea.vmem %s822_s7, %s648_s18 }
  0x20   : > { %v281_v6 = vld [vmem:[%s266_s19 + $0x8] sm:$0xff]  ;;  %v283_v7 = vld [vmem:[%s266_s19 + $0x18] sm:$0xff]  ;;  %v280_v8 = vld [vmem:[%s266_s19] sm:$0xff]  ;;  %v436_v39 = vrot.slane %v431_v33, %v435_v31  ;;  %v440_v45 = vrot.slane %v431_v33, %v439_v35 }
  0x21   : > { %v649_v9 = vpack.c.bf16 %v283_v7, %v281_v6  ;;  %v282_v10 = vld [vmem:[%s266_s19 + $0x10] sm:$0xff]  ;;  %v285_v11 = vld [vmem:[%s266_s19 + $0x28] sm:$0xff]  ;;  %v287_v12 = vld [vmem:[%s266_s19 + $0x38] sm:$0xff] }
  0x22   : > { %v651_v13 = vpack.c.bf16 %v282_v10, %v280_v8  ;;  %v653_v14 = vpack.c.bf16 %v287_v12, %v285_v11  ;;  %v284_v15 = vld [vmem:[%s266_s19 + $0x20] sm:$0xff]  ;;  %v286_v16 = vld [vmem:[%s266_s19 + $0x30] sm:$0xff]  ;;  %v289_v20 = vld [vmem:[%s266_s19 + $0x48] sm:$0xf] }
  0x23   : > { %650 = vmatprep.subr.bf16.mxu0 %v649_v9  ;;  %v655_v19 = vpack.c.bf16 %v286_v16, %v284_v15  ;;  %v288_v21 = vld [vmem:[%s266_s19 + $0x40] sm:$0xf]  ;;  %v455_v11 = vld [vmem:[%s453_s17 + $0x8] sm:$0xff] }
  0x24   : > { %652 = vmatpush1.bf16.msra.mxu0 %v651_v13  ;;  %v454_v10 = vld [vmem:[%s453_s17] sm:$0xff] }
  0x25   : > { %654 = vmatprep.subr.bf16.mxu0 %v653_v14 }
  0x28   : > { %656 = vmatpush1.bf16.msra.mxu0 %v655_v19 }
  0x29   : > { %637 = vmatprep.subr.msk.mxu0 %vm327_vm0, %v289_v20 }
  0x2c   : > { %638 = vmatpush1.msk.msra.mxu0 %vm327_vm0, %v288_v21 }
  0x2d   : > { %639 = vmatmul.mubr.msk.f32.vlgmr.msra.gmra.mrb[0].mxu0 %vm314_vm1, %v276_v22 }
  0x2e   : > { %404 = vmatprep.mubr.f32.mxu0 %v702_v0 }
  0x31   : > { %640 = vmatmul.mubr.msk.f32.gmra.mrb[2].mxu0 %vm314_vm1, %v277_v23 }
  0x32   : > { %410 = vmatprep.mubr.f32.mxu0 %v702_v0 }
  0x35   : > { %641 = vmatmul.mubr.msk.f32.gmra.mrb[4].mxu0 %vm314_vm1, %v278_v24 }
  0x36   : > { %416 = vmatprep.mubr.f32.mxu0 %v702_v0 }
  0x39   : > { %642 = vmatmul.mubr.msk.f32.gmra.mrb[6].mxu0 %vm314_vm1, %v279_v25 }
  0x96   : > { %v297_v28 = vpop.permute.xlu0 %296  ;;  %v307_v42 = vpop.permute.xlu1 %306 }
  0x9a   : > { %v302_v36 = vpop.permute.xlu0 %301  ;;  %v312_v57 = vpop.permute.xlu1 %311 }
  0x9e   : > { %v462_v12 = vpop.permute.xlu0 %461  ;;  %v467_v17 = vpop.permute.xlu1 %466 }
 0x100   : > { %v400_v29 = vpop.f32.mrb[0].mxu0 }
 0x101   : > { %v401_v30 = vadd.f32 %v400_v29, %v297_v28  ;;  %v402_v32 = vpop.f32.mrb[1].mxu0 }
 0x102   : > { %v403_v34 = vadd.f32 %v402_v32, %v297_v28 }
 0x103   : > { %v423_v38 = vmax.f32 %v401_v30, 0.0 }
 0x104   : > { %v406_v37 = vpop.f32.mrb[2].mxu0  ;;  %v424_v43 = vmax.f32 %v403_v34, 0.0 }
 0x105   : > { %v407_v40 = vadd.f32 %v406_v37, %v302_v36  ;;  %v408_v41 = vpop.f32.mrb[3].mxu0  ;;  %v443_v49 = vmul.f32 %v436_v39, %v423_v38 }
 0x106   : > { %v409_v44 = vadd.f32 %v408_v41, %v302_v36  ;;  %v444_v54 = vmul.f32 %v440_v45, %v424_v43 }
 0x107   : > { %v425_v46 = vmax.f32 %v407_v40, 0.0 }
 0x108   : > { %v426_v47 = vmax.f32 %v409_v44, 0.0  ;;  %v412_v48 = vpop.f32.mrb[4].mxu0 }
 0x109   : > { %v445_v50 = vmul.f32 %v436_v39, %v425_v46  ;;  %v413_v51 = vadd.f32 %v412_v48, %v307_v42  ;;  %v414_v52 = vpop.f32.mrb[5].mxu0 }
 0x10a   : > { %v415_v53 = vadd.f32 %v414_v52, %v307_v42  ;;  %v446_v55 = vmul.f32 %v440_v45, %v426_v47 }
 0x10b   : > { %v659_v56 = vpack.c.bf16 %v445_v50, %v443_v49  ;;  %v427_v60 = vmax.f32 %v413_v51, 0.0 }
 0x10c   : > { %v418_v58 = vpop.f32.mrb[6].mxu0  ;;  %v657_v59 = vpack.c.bf16 %v446_v55, %v444_v54  ;;  %v428_v63 = vmax.f32 %v415_v53, 0.0 }
 0x10d   : > { %v419_v61 = vadd.f32 %v418_v58, %v312_v57  ;;  %v420_v62 = vpop.f32.mrb[7].mxu0  ;;  %v447_v4 = vmul.f32 %v436_v39, %v427_v60 }
 0x10e   : > { %v421_v1 = vadd.f32 %v420_v62, %v312_v57  ;;  %658 = vmatprep.subr.bf16.mxu1 %v657_v59  ;;  %v448_v6 = vmul.f32 %v440_v45, %v428_v63 }
 0x10f   : > { %v429_v2 = vmax.f32 %v419_v61, 0.0  ;;  %660 = vmatpush1.bf16.msra.mxu1 %v659_v56 }
 0x110   : > { %v430_v3 = vmax.f32 %v421_v1, 0.0 }
 0x111   : > { %v449_v5 = vmul.f32 %v436_v39, %v429_v2 }
 0x112   : > { %v450_v7 = vmul.f32 %v440_v45, %v430_v3 }
 0x113   : > { %v663_v8 = vpack.c.bf16 %v449_v5, %v447_v4 }
 0x114   : > { %v661_v9 = vpack.c.bf16 %v450_v7, %v448_v6 }
 0x116   : > { %662 = vmatprep.subr.bf16.mxu1 %v661_v9 }
 0x117   : > { %664 = vmatpush1.bf16.msra.mxu1 %v663_v8 }
 0x11a   : > { %644 = vmatmul.mubr.msk.f32.vlgmr.msra.gmra.mrb[0].mxu1 %vm469_vm2, %v454_v10 }
 0x11b   : > { %546 = vmatprep.mubr.f32.mxu1 %v702_v0 }
 0x11e   : > { %645 = vmatmul.mubr.msk.f32.gmra.mrb[2].mxu1 %vm469_vm2, %v455_v11 }
 0x1ed   : > { %v542_v13 = vpop.f32.mrb[0].mxu1 }
 0x1ee   : > { %v543_v14 = vadd.f32 %v542_v13, %v462_v12  ;;  %v544_v15 = vpop.f32.mrb[1].mxu1 }
 0x1ef   : > { %v545_v16 = vadd.f32 %v544_v15, %v462_v12 }
 0x1f0   : > { %553 = vst [vmem:[%s275_s22] sm:$0xff] %v543_v14 }
 0x1f1   : > { %554 = vst [vmem:[%s275_s22 + $0x8] sm:$0xff] %v545_v16  ;;  %v548_v18 = vpop.f32.mrb[2].mxu1 }
 0x1f2   : > { %v549_v19 = vadd.f32 %v548_v18, %v467_v17  ;;  %v550_v20 = vpop.f32.mrb[3].mxu1 }
 0x1f3   : > { %v551_v21 = vadd.f32 %v550_v20, %v467_v17 }
 0x1f4   : > { %555 = vst [vmem:[%s275_s22 + $0x10] sm:$0xff] %v549_v19 }
 0x1f5   : > { %556 = vst [vmem:[%s275_s22 + $0x18] sm:$0xff] %v551_v21 }
 0x1f6 PF: > { %s23_s29 = sadd.s32 1, %s699_s29  }
 0x1f7   : > { %p20_p9 = scmp.ge.s32.totalorder %s23_s29, 4  }
 0x1f9   :  { %22 = sbr.rel (!%p20_p9) target bundleno = 16 (0x10), region = 79 }

</bundles_post_ra>
